<compile_context>
chip_gen: v7x
topology: tpu7x:2x2x1
jax: 0.10.0
libtpu: 0.0.40
codegen_flags: <defaults>
</compile_context>

<pallas_src>
import functools

import jax
import jax.numpy as jnp
from jax.experimental import pallas as pl
from jax.experimental.pallas import tpu as pltpu


# ---------------------------------------------------------------------------
# Pallas kernel: out = neg_coeff * g   (neg_coeff baked in as a constant)
# ---------------------------------------------------------------------------
def _neg_scale_kernel(g_ref, o_ref, *, neg_coeff):
    o_ref[...] = g_ref[...] * jnp.asarray(neg_coeff, dtype=g_ref.dtype)


_LANE_CANDIDATES = (4096, 2048, 1024, 512, 256, 128)
_MAX_BLOCK_BYTES = 4 * 1024 * 1024  # keeps 2 bufs x (in+out) well under v7x's VMEM


def _choose_block_rows(rows, lanes, itemsize):
    """Pick a block_rows that exactly divides rows, respects sublane packing
    (8 f32 / 16 bf16 / 32 int8), keeps blocks <= ~4 MiB, and prefers >= 2
    grid steps (v7x has 2 TensorCores).  Returns None if no clean tiling."""
    sublane = max(8, 32 // itemsize)
    target = max(sublane, _MAX_BLOCK_BYTES // (lanes * itemsize))
    if rows <= target:
        if rows % (2 * sublane) == 0:
            return rows // 2        # 2+ grid steps, still sublane-aligned
        return rows                 # whole-rows block (block == full dim is legal)
    # Largest sublane-multiple divisor of rows that stays under the byte cap.
    d = (target // sublane) * sublane
    while d >= sublane:
        if rows % d == 0:
            return d
        d -= sublane
    return None


def _reverse_scale(g, coeff):
    """Compute -coeff * g with a Pallas kernel when the shape tiles cleanly,
    otherwise with plain XLA (already memory-bound at roofline)."""
    neg_coeff = -float(coeff)
    n = g.size
    lanes = next((c for c in _LANE_CANDIDATES if n % c == 0), 0)
    if lanes == 0 or n == 0:
        return (neg_coeff * g).astype(g.dtype)

    rows = n // lanes
    itemsize = jnp.dtype(g.dtype).itemsize
    block_rows = _choose_block_rows(rows, lanes, itemsize)
    if block_rows is None:
        return (neg_coeff * g).astype(g.dtype)

    slab = g.reshape(rows, lanes)   # contiguous reshape: metadata only, no copy
    grid = (rows // block_rows,)    # exact divisor -> no dropped remainder

    out = pl.pallas_call(
        functools.partial(_neg_scale_kernel, neg_coeff=neg_coeff),
        out_shape=jax.ShapeDtypeStruct((rows, lanes), g.dtype),
        grid_spec=pltpu.PrefetchScalarGridSpec(
            num_scalar_prefetch=0,
            grid=grid,
            in_specs=[pl.BlockSpec((block_rows, lanes), lambda i: (i, 0))],
            out_specs=pl.BlockSpec((block_rows, lanes), lambda i: (i, 0)),
        ),
        compiler_params=pltpu.CompilerParams(
            dimension_semantics=("parallel",),
        ),
    )(slab)
    return out.reshape(g.shape)


# ---------------------------------------------------------------------------
# GRL: forward = identity (no kernel, no copy); backward = -coeff * grad
# ---------------------------------------------------------------------------
@functools.partial(jax.custom_vjp, nondiff_argnums=(1,))
def grl(x, coeff=1.0):
    """Gradient Reversal Layer. Forward: identity. Backward: -coeff * grad."""
    return x


def _grl_fwd(x, coeff):
    return x, None


def _grl_bwd(coeff, _, g):
    return (_reverse_scale(g, coeff),)


grl.defvjp(_grl_fwd, _grl_bwd)


if __name__ == "__main__":
    key = jax.random.PRNGKey(0)

    # Small NCHW input, matching a PyTorch conv-style tensor.
    x = jax.random.normal(key, (2, 4, 16, 16), dtype=jnp.float32)

    # Forward must be exact identity (and is a true no-op — no kernel launch).
    y = grl(x)
    jax.block_until_ready(y)
    assert y.shape == x.shape and y.dtype == x.dtype
    assert bool(jnp.all(y == x))

    # Run the Pallas backward kernel directly once.
    r = _reverse_scale(x, 1.0)
    jax.block_until_ready(r)
    assert bool(jnp.allclose(r, -x))

    # Backward through custom_vjp: dx = -coeff * upstream grad.
    g = jax.grad(lambda v: jnp.sum(grl(v, 1.0) * 2.0))(x)
    jax.block_until_ready(g)
    assert bool(jnp.allclose(g, -2.0 * jnp.ones_like(x)))

    # Slightly larger input exercising the multi-block (grid >= 2) path and a
    # non-unit coefficient.
    x2 = jax.random.normal(jax.random.PRNGKey(1), (4, 4, 32, 128),
                           dtype=jnp.float32)
    g2 = jax.grad(lambda v: jnp.sum(grl(v, 2.0)))(x2)
    jax.block_until_ready(g2)
    assert bool(jnp.allclose(g2, -2.0 * jnp.ones_like(x2)))

    print("KERNEL_OK")
</pallas_src>

<mosaic_0001>
module attributes {stable_mosaic.version = 11 : i64} {
  func.func @_neg_scale_kernel(%arg0: i32, %arg1: memref<1x2048xf32, #tpu.memory_space<vmem>>, %arg2: memref<1x2048xf32, #tpu.memory_space<vmem>>) attributes {dimension_semantics = [#tpu.dimension_semantics<parallel>], iteration_bounds = array<i64: 1>, scalar_prefetch = 0 : i64, scratch_operands = 0 : i64, tpu.core_type = #tpu.core_type<tc>, window_params = [{transform_indices = @transform_0, window_bounds = array<i64: 1, 2048>}, {transform_indices = @transform_1, window_bounds = array<i64: 1, 2048>}]} {
    %c0 = arith.constant 0 : index
    %c0_0 = arith.constant 0 : index
    %0 = vector.load %arg1[%c0, %c0_0] : memref<1x2048xf32, #tpu.memory_space<vmem>>, vector<1x2048xf32>
    %cst = arith.constant -1.000000e+00 : f32
    %1 = vector.broadcast %cst : f32 to vector<1x2048xf32>
    %2 = arith.mulf %0, %1 : vector<1x2048xf32>
    %c0_1 = arith.constant 0 : index
    %c0_2 = arith.constant 0 : index
    %3 = vector.load %arg2[%c0_1, %c0_2] : memref<1x2048xf32, #tpu.memory_space<vmem>>, vector<1x2048xf32>
    tpu.vector_store %arg2[%c0_1, %c0_2], %2 {strides = array<i32>} : memref<1x2048xf32, #tpu.memory_space<vmem>>, vector<1x2048xf32>,
    return
  }
  func.func @transform_0(%arg0: i32) -> (i32, i32) {
    %c0_i32 = arith.constant 0 : i32
    %c0_i32_0 = arith.constant 0 : i32
    return %arg0, %c0_i32 : i32, i32
  }
  func.func @transform_1(%arg0: i32) -> (i32, i32) {
    %c0_i32 = arith.constant 0 : i32
    %c0_i32_0 = arith.constant 0 : i32
    return %arg0, %c0_i32 : i32, i32
  }
}

</mosaic_0001>

<bundles_post_ra>
// kernel: tpu_custom_call.1
= control target key start
LH: loop header
LB: loop body
LE: loop exit
PB: predicated region body
PF: predicated region fallthrough
CT: control target
= control target key end

     0   :  { %6 = vsyncpa [#allocation3], 0  ;;  %s128_s0 = inlined_call_operand.hbm [shape: f32[1,2048], index: 0, kind: input, shape index: {}]   ;;  %s129_s1 = inlined_call_operand.hbm [shape: f32[1,2048], index: 1, kind: output, shape index: {}]  }
   0x1   :  { %7 = vsyncpa [#allocation4], 0  ;;  %s92_s6 = smov [#allocation2]   ;;  %s44_s10 = scalar_lea.hbm %s128_s0, 256 }
   0x2   :  { %s14_s7 = sshll.u32 %s92_s6, 4  ;;  %p45_p0 = scmp.ne.s32.totalorder %s128_s0, %s44_s10  ;;  %s15_s7 = int_to_ptr.vmem [resolvable:$true] %s14_s7 }
   0x3   :  { %p48_p1 = scmp.lt.u32.totalorder %s44_s10, %s128_s0 }
   0x5   :  { %p50_p2 = pnand %p48_p1, %p45_p0 }
   0x7   :  { %53 = shalt.err (!%p50_p2)
}
   0x8   :  { %s54_s15 = scalar_lea.vmem %s15_s7, 256  ;;  %p59_p4 = scmp.lt.s32.totalorder %s15_s7, %s15_s7 }
   0x9   :  { %p55_p3 = scmp.ne.s32.totalorder %s15_s7, %s54_s15  ;;  %p60_p5 = scmp.lt.s32.totalorder %s54_s15, %s54_s15 }
   0xb   :  { %p61_p6 = por %p60_p5, %p59_p4 }
   0xd   :  { %p62_p7 = pnand %p61_p6, %p55_p3 }
   0xf   :  { %65 = shalt.err (!%p62_p7)
}
  0x10   :  { %17 = dma.hbm_to_vmem [thread:$0]  %s128_s0, 256, %s15_s7, [#allocation3]  }
  0x11   :  { %88 = dma.done.wait [#allocation3], 256  }
  0x12   :  { %89 = vsyncadd [#allocation3], 4294967040  ;;  %s93_s18 = smov [#allocation5]   ;;  %v21_v0 = vld [vmem:[#allocation2] sm:$0xff]  ;;  %v22_v1 = vld [vmem:[#allocation2 + $0x8] sm:$0xff] }
  0x13   :  { %s33_s19 = sshll.u32 %s93_s18, 4  ;;  %v23_v2 = vmul.f32 -1.0, %v21_v0  ;;  %v24_v3 = vmul.f32 -1.0, %v22_v1  ;;  %s34_s19 = int_to_ptr.vmem [resolvable:$true] %s33_s19 }
  0x14   :  { %s66_s20 = scalar_lea.vmem %s34_s19, 256  ;;  %p71_p9 = scmp.lt.s32.totalorder %s34_s19, %s34_s19 }
  0x15   :  { %25 = vst [vmem:[#allocation5] sm:$0xff] %v23_v2  ;;  %26 = vst [vmem:[#allocation5 + $0x8] sm:$0xff] %v24_v3  ;;  %p67_p8 = scmp.ne.s32.totalorder %s34_s19, %s66_s20  ;;  %p72_p10 = scmp.lt.s32.totalorder %s66_s20, %s66_s20 }
  0x17   :  { %p73_p11 = por %p72_p10, %p71_p9 }
  0x19   :  { %p74_p12 = pnand %p73_p11, %p67_p8 }
  0x1b   :  { %77 = shalt.err (!%p74_p12)
}
  0x1c   :  { %s78_s22 = scalar_lea.hbm %s129_s1, 256 }
  0x1d   :  { %p79_p13 = scmp.ne.s32.totalorder %s129_s1, %s78_s22  ;;  %p82_p0 = scmp.lt.u32.totalorder %s78_s22, %s129_s1 }
  0x1f   :  { %p84_p1 = pnand %p82_p0, %p79_p13 }
  0x21   :  { %87 = shalt.err (!%p84_p1)
}
  0x22   :  { %36 = dma.vmem_to_hbm [thread:$0]  %s34_s19, 256, %s129_s1, [#allocation4]  }
  0x23   :  { %90 = dma.done.wait [#allocation4], 256  }
  0x24   :  { %91 = vsyncadd [#allocation4], 4294967040 }
  0x25   :  { %40 = vsyncpa [#allocation3], 1 }
  0x26   :  { %41 = vsyncpa [#allocation4], 1 }

</bundles_post_ra>
